<compile_context>
chip_gen: v5e
topology: v5e:2x2
jax: 0.10.0
libtpu: 0.0.40
codegen_flags: <defaults>
</compile_context>

<pallas_src>
import jax
import jax.numpy as jnp
from jax.experimental import pallas as pl
from jax.experimental.pallas import tpu as pltpu


# ----------------------------------------------------------------------------
# Kernel: per-(batch, spatial-tile) matmul  (P, C) @ (C, T) -> (P, T)
# ----------------------------------------------------------------------------
def _corr_map_kernel(x_ref, proto_ref, o_ref):
    # x_ref:     (1, C, T)   one batch, one spatial tile of flattened H*W
    # proto_ref: (1, P, C)   that batch's prototypes (fetched once per batch)
    # o_ref:     (1, P, T)   correlation maps for this tile (lane-dense in T)
    o_ref[0] = jnp.dot(
        proto_ref[0], x_ref[0], preferred_element_type=jnp.float32
    ).astype(o_ref.dtype)


def _cdiv(a, b):
    return -(-a // b)


def _select_hw_tile(hw, c, p, itemsize, batch):
    """VMEM-budget-aware spatial tile (lanes): multiple of 128, or the full HW."""
    # Per-step double-buffered VMEM: x block + out block (scale with lanes) and
    # the proto block (fixed). Budget is conservative enough for v7x (64 MiB
    # physical) and well under the explicit vmem_limit_bytes set below.
    budget = 28 * 1024 * 1024
    per_lane = 2 * (c + p) * itemsize
    fixed = 2 * p * c * itemsize
    max_lanes = max(128, (budget - fixed) // per_lane)

    if max_lanes >= hw:
        t = hw  # whole spatial extent in one (full-dim) block: no tiling overhead
    else:
        t = min((max_lanes // 128) * 128, 8192)  # big tiles OK (v6e), capped
        t = max(t, 128)

    # v7x shards "parallel" grid axes across its 2 TensorCores: make sure there
    # are enough parallel steps, without shredding tiny problems into extra
    # grid steps (per-step overhead ~0.35 us).
    min_units = 2 if hw <= 512 else 4
    while t > 128 and batch * _cdiv(hw, t) < min_units:
        t = max(128, ((t // 2) // 128) * 128)
    return t


@jax.jit
def get_correlation_map(x, prototype_block):
    """x: (B, C, H, W), prototype_block: (B, P, C) -> (B, P, H, W)."""
    B, C, H, W = x.shape
    P = prototype_block.shape[1]
    HW = H * W

    # Keep the streamed operands in the caller's dtype (bf16 stays bf16);
    # accumulate in f32 on the MXU inside the kernel.
    dtype = jnp.result_type(x.dtype, prototype_block.dtype)
    x_flat = x.reshape(B, C, HW).astype(dtype)   # free reshape (NCHW contiguous)
    proto = prototype_block.astype(dtype)
    itemsize = jnp.dtype(dtype).itemsize

    t_hw = _select_hw_tile(HW, C, P, itemsize, B)
    n_hw = _cdiv(HW, t_hw)  # ragged tail handled by Pallas partial-block masking

    out = pl.pallas_call(
        _corr_map_kernel,
        out_shape=jax.ShapeDtypeStruct((B, P, HW), dtype),
        grid_spec=pltpu.PrefetchScalarGridSpec(
            num_scalar_prefetch=0,
            grid=(B, n_hw),  # spatial innermost -> proto DMA'd once per batch
            in_specs=[
                # x tile: one batch image, one spatial chunk (C full, T lanes)
                pl.BlockSpec((1, C, t_hw), lambda b, j: (b, 0, j)),
                # prototypes: one batch's full (P, C) block, reused across tiles
                pl.BlockSpec((1, P, C), lambda b, j: (b, 0, 0)),
            ],
            out_specs=pl.BlockSpec((1, P, t_hw), lambda b, j: (b, 0, j)),
        ),
        compiler_params=pltpu.CompilerParams(
            dimension_semantics=("parallel", "parallel"),
            vmem_limit_bytes=48 * 1024 * 1024,
        ),
        cost_estimate=pl.CostEstimate(
            flops=2 * B * P * C * HW,
            bytes_accessed=(B * C * HW + B * P * HW + B * P * C) * itemsize,
            transcendentals=0,
        ),
    )(x_flat, proto)

    return out.reshape(B, P, H, W)


if __name__ == "__main__":
    key = jax.random.PRNGKey(0)
    kx, kp = jax.random.split(key)

    # Small shapes consistent with the module:
    #   x: (B, C, H, W), prototype_block: (B, P, C)  ->  out: (B, P, H, W)
    B, C, H, W, P = 2, 32, 16, 16, 8
    x = jax.random.normal(kx, (B, C, H, W), jnp.float32)
    prototype_block = jax.random.normal(kp, (B, P, C), jnp.float32)

    out = get_correlation_map(x, prototype_block)
    jax.block_until_ready(out)

    # Reference: per-batch 1x1 conv == batched contraction over channels.
    ref = jnp.einsum("bpc,bchw->bphw", prototype_block, x)

    assert out.shape == (B, P, H, W)
    assert bool(jnp.all(jnp.isfinite(out)))
    assert bool(jnp.allclose(out, ref, atol=1e-4, rtol=1e-4))
    print("KERNEL_OK")
</pallas_src>

<mosaic_0001>
module attributes {stable_mosaic.version = 11 : i64} {
  func.func @_corr_map_kernel(%arg0: i32, %arg1: i32, %arg2: memref<1x32x256xf32, #tpu.memory_space<vmem>>, %arg3: memref<1x8x32xf32, #tpu.memory_space<vmem>>, %arg4: memref<1x8x256xf32, #tpu.memory_space<vmem>>) attributes {dimension_semantics = [#tpu.dimension_semantics<parallel>, #tpu.dimension_semantics<parallel>], iteration_bounds = array<i64: 2, 1>, scalar_prefetch = 0 : i64, scratch_operands = 0 : i64, tpu.core_type = #tpu.core_type<tc>, window_params = [{transform_indices = @transform_0, window_bounds = array<i64: 1, 32, 256>}, {transform_indices = @transform_1, window_bounds = array<i64: 1, 8, 32>}, {transform_indices = @transform_2, window_bounds = array<i64: 1, 8, 256>}]} {
    %c0 = arith.constant 0 : index
    %c0_0 = arith.constant 0 : index
    %c0_1 = arith.constant 0 : index
    %0 = vector.load %arg3[%c0, %c0_0, %c0_1] : memref<1x8x32xf32, #tpu.memory_space<vmem>>, vector<1x8x32xf32>
    %1 = vector.shape_cast %0 : vector<1x8x32xf32> to vector<8x32xf32>
    %c0_2 = arith.constant 0 : index
    %c0_3 = arith.constant 0 : index
    %c0_4 = arith.constant 0 : index
    %2 = vector.load %arg2[%c0_2, %c0_3, %c0_4] : memref<1x32x256xf32, #tpu.memory_space<vmem>>, vector<1x32x256xf32>
    %3 = vector.shape_cast %2 : vector<1x32x256xf32> to vector<32x256xf32>
    %cst = arith.constant dense<0.000000e+00> : vector<8x256xf32>
    %4 = tpu.matmul %1, %3, %cst {dimension_numbers = #tpu.dot_dimension_numbers<[1], [0], [0], [1], [0, 0, 1, 1], [], []>} : vector<8x32xf32>, vector<32x256xf32>, vector<8x256xf32> -> vector<8x256xf32>
    %c0_5 = arith.constant 0 : index
    %c0_6 = arith.constant 0 : index
    %c0_7 = arith.constant 0 : index
    %5 = vector.load %arg4[%c0_5, %c0_6, %c0_7] : memref<1x8x256xf32, #tpu.memory_space<vmem>>, vector<1x8x256xf32>
    %6 = vector.shape_cast %5 : vector<1x8x256xf32> to vector<8x256xf32>
    %7 = vector.shape_cast %4 : vector<8x256xf32> to vector<1x8x256xf32>
    tpu.vector_store %arg4[%c0_5, %c0_6, %c0_7], %7 {strides = array<i32>} : memref<1x8x256xf32, #tpu.memory_space<vmem>>, vector<1x8x256xf32>,
    return
  }
  func.func @transform_0(%arg0: i32, %arg1: i32) -> (i32, i32, i32) {
    %c0_i32 = arith.constant 0 : i32
    %c0_i32_0 = arith.constant 0 : i32
    return %arg0, %c0_i32, %arg1 : i32, i32, i32
  }
  func.func @transform_1(%arg0: i32, %arg1: i32) -> (i32, i32, i32) {
    %c0_i32 = arith.constant 0 : i32
    %c0_i32_0 = arith.constant 0 : i32
    %c0_i32_1 = arith.constant 0 : i32
    return %arg0, %c0_i32, %c0_i32_0 : i32, i32, i32
  }
  func.func @transform_2(%arg0: i32, %arg1: i32) -> (i32, i32, i32) {
    %c0_i32 = arith.constant 0 : i32
    %c0_i32_0 = arith.constant 0 : i32
    return %arg0, %c0_i32, %arg1 : i32, i32, i32
  }
}

</mosaic_0001>

<bundles_post_ra>
// kernel: get_correlation_map.1
= control target key start
LH: loop header
LB: loop body
LE: loop exit
PB: predicated region body
PF: predicated region fallthrough
CT: control target
= control target key end

     0   :  { %s433_s9 = smov 0   ;;  %s435_s10 = smov 0   ;;  %s469_s0 = inlined_call_operand.vmem [shape: f32[2,32,256], index: 0, kind: input, shape index: {}]   ;;  %s470_s1 = inlined_call_operand.vmem [shape: f32[2,8,32], index: 1, kind: input, shape index: {}]   ;;  %s471_s2 = inlined_call_operand.vmem [shape: f32[2,8,256], index: 2, kind: output, shape index: {}]  }
   0x1   :  { %s437_s11 = smov 0  }
   0x2 LB: > { %s24_s12 = sadd.s32 1, %s412_s10  ;;  %p358_p0 = scmp.ge.s32.totalorder %s416_s11, 1  ;;  %s416_s11 = sphi %s437_s11, %s12_s11   ;;  %s412_s10 = sphi %s435_s10, %s473_s10   ;;  %s408_s9 = sphi %s433_s9, %s472_s9  }
   0x3   : > { %p26_p1 = scmp.ge.s32.totalorder %s24_s12, 2  ;;  %p142_p2 = scmp.lt.s32.totalorder %s416_s11, 3 }
   0x5   : > { %s475_s12 = smov (%p26_p1, %s24_s12), 0  ;;  %p143_p3 = pnand %p358_p0, %p142_p2 }
   0x6   : > { %p177_p4 = scmp.lt.s32.totalorder (!%p143_p3), %s408_s9, 1 }
   0x7   : > { %146 = sbr.rel (%p143_p3) target bundleno = 151 (0x97), region = 28 }
   0xc   : > { %s477_s9 = smov (!%p177_p4, %s408_s9), 1  ;;  %vm209_vm0 = vcmask 261120  }
   0xd   : > { %s368_s13 = sshll.u32 %s477_s9, 6  ;;  %s361_s17 = sshll.u32 %s477_s9, 3 }
   0xe   : > { %s184_s16 = scalar_lea.vmem %s469_s0, %s368_s13  ;;  %s189_s20 = scalar_lea.vmem %s470_s1, %s361_s17 }
   0xf   : > { %v207_v0 = vld [vmem:[%s184_s16 + $0x30] sm:$0xff]  ;;  %v208_v1 = vld [vmem:[%s184_s16 + $0x38] sm:$0xff]  ;;  %v205_v2 = vld [vmem:[%s184_s16 + $0x20] sm:$0xff]  ;;  %s369_s21 = sshll.u32 %s477_s9, 4 }
  0x10   : > { %225 = vmatpush.msra.mxu0 %v207_v0  ;;  %245 = vmatpush.msra.mxu1 %v208_v1  ;;  %v206_v3 = vld [vmem:[%s184_s16 + $0x28] sm:$0xff]  ;;  %v203_v4 = vld [vmem:[%s184_s16 + $0x10] sm:$0xff]  ;;  %v204_v5 = vld [vmem:[%s184_s16 + $0x18] sm:$0xff]  ;;  %s198_s24 = scalar_lea.vmem %s471_s2, %s369_s21 }
  0x11   : > { %v201_v6 = vld [vmem:[%s184_s16] sm:$0xff]  ;;  %v202_v7 = vld [vmem:[%s184_s16 + $0x8] sm:$0xff] }
  0x12   : > { %226 = vmatpush.msra.mxu0 %v205_v2  ;;  %246 = vmatpush.msra.mxu1 %v206_v3  ;;  %v200_v8 = vld [vmem:[%s189_s20] sm:$0xff] }
  0x14   : > { %227 = vmatpush.msra.mxu0 %v203_v4  ;;  %247 = vmatpush.msra.mxu1 %v204_v5 }
  0x16   : > { %228 = vmatpush.msra.mxu0 %v201_v6  ;;  %248 = vmatpush.msra.mxu1 %v202_v7 }
  0x17   : > { %364 = vmatmul.msk.f32.vlgmr.msra.gmra.mxu0 %vm209_vm0, %v200_v8  ;;  %365 = vmatmul.msk.f32.vlgmr.msra.gmra.mxu1 %vm209_vm0, %v200_v8 }
  0x94   : > { %v230_v9 = vpop.f32.mrf.mxu0  ;;  %v250_v10 = vpop.f32.mrf.mxu1 }
  0x95   : > { %253 = vst [vmem:[%s198_s24] sm:$0xff] %v230_v9 }
  0x96   : > { %254 = vst [vmem:[%s198_s24 + $0x8] sm:$0xff] %v250_v10 }
  0x97 PF: > { %s12_s11 = sadd.s32 1, %s416_s11   ;;  %s472_s9 = smov %s412_s10 }
  0x98   : > { %p9_p5 = scmp.ge.s32.totalorder %s12_s11, 4   ;;  %s473_s10 = smov %s475_s12 }
  0x9a   :  { %11 = sbr.rel (!%p9_p5) target bundleno = 2 (0x2), region = 61 }

</bundles_post_ra>
